<compile_context>
chip_gen: v5e
topology: v5e:2x2
jax: 0.10.0
libtpu: 0.0.40
codegen_flags: <defaults>
</compile_context>

<pallas_src>
import jax
import jax.numpy as jnp
import numpy as np
from jax.experimental import pallas as pl
from jax.experimental.pallas import tpu as pltpu


def scalar_mult_kernel(k_ref, x_ref, o_ref):
    # k_ref: SMEM f32 scalar (shape (1,)); x_ref/o_ref: (tr, cols) VMEM tiles.
    xf = x_ref[...].astype(jnp.float32)
    o_ref[...] = (xf * k_ref[0]).astype(o_ref.dtype)


def _round_up(n, m):
    return ((n + m - 1) // m) * m


def scalar_mult(x, k):
    """Elementwise out = x * k, same shape/dtype as x (multiply done in f32)."""
    orig_shape = x.shape
    dtype = x.dtype
    itemsize = jnp.dtype(dtype).itemsize
    total = int(np.prod(orig_shape)) if len(orig_shape) else 1

    if total == 0:
        return x  # nothing to do for empty arrays

    # --- lane-dense 2-D view -------------------------------------------------
    # Pad the flat view up to a multiple of 128 so every column block is a full
    # 128-lane store (no masked vst.msk, no single-block fallback).
    flat = x.reshape(-1)
    padded_total = _round_up(total, 128)
    pad = padded_total - total
    if pad:
        flat = jnp.pad(flat, (0, pad))

    cols = 128
    for c in (1024, 512, 256):
        if padded_total % c == 0:
            cols = c
            break
    rows = padded_total // cols

    # --- row-tile sizing by byte budget --------------------------------------
    # ~4 MiB per tile: measured elementwise streaming hits ~85% of HBM roofline
    # past ~1 MiB and plateaus, while 4 double-buffered tiles stay well under
    # v7x's 64 MiB per-TC VMEM.
    tile_byte_budget = 4 * 1024 * 1024
    # Sublane-packing minimum: 8 rows f32, 16 bf16, 32 int8/fp8.
    min_tr = 8 * max(1, 4 // itemsize)

    if rows <= min_tr:
        tr = rows  # block row dim == full array dim: always legal
    else:
        tr = (tile_byte_budget // (cols * itemsize)) // min_tr * min_tr
        tr = max(min_tr, tr)
        tr = min(tr, _round_up(rows, min_tr))
        # Megacore (v7x): make sure the parallel axis has >= 2 steps when the
        # input is big enough to split, so both TensorCores stream HBM.
        if pl.cdiv(rows, tr) < 2 and rows >= 2 * min_tr:
            tr = max(min_tr, _round_up(pl.cdiv(rows, 2), min_tr))

    grid = (pl.cdiv(rows, tr),)

    tile_bytes = tr * cols * itemsize
    # 2 input + 2 output buffers plus headroom; never request all of VMEM.
    vmem_limit = int(min(48 * 1024 * 1024,
                         max(16 * 1024 * 1024, 4 * tile_bytes + (4 << 20))))

    x2 = flat.reshape(rows, cols)
    k_arr = jnp.asarray(k, dtype=jnp.float32).reshape((1,))

    out2 = pl.pallas_call(
        scalar_mult_kernel,
        out_shape=jax.ShapeDtypeStruct((rows, cols), dtype),
        grid=grid,
        in_specs=[
            pl.BlockSpec(memory_space=pltpu.MemorySpace.SMEM),  # k (f32 scalar)
            pl.BlockSpec((tr, cols), lambda i: (i, 0)),         # x tile
        ],
        out_specs=pl.BlockSpec((tr, cols), lambda i: (i, 0)),
        compiler_params=pltpu.CompilerParams(
            dimension_semantics=("parallel",),
            vmem_limit_bytes=vmem_limit,
        ),
    )(k_arr, x2)

    out_flat = out2.reshape(-1)
    if pad:
        out_flat = out_flat[:total]
    return out_flat.reshape(orig_shape)


if __name__ == "__main__":
    key = jax.random.PRNGKey(0)
    x = jax.random.normal(key, (2, 4, 16, 16), dtype=jnp.float32)

    # nn.Parameter(torch.tensor(0.0)) -> k initialized to 0.0
    k = jnp.float32(0.0)
    out = jax.jit(scalar_mult)(x, k)
    jax.block_until_ready(out)
    np.testing.assert_allclose(np.asarray(out), np.asarray(x) * 0.0,
                               rtol=1e-6, atol=1e-6)

    # Non-trivial scale (same trace: 0-d f32 arg).
    k2 = jnp.float32(1.7)
    out2 = jax.jit(scalar_mult)(x, k2)
    jax.block_until_ready(out2)
    np.testing.assert_allclose(np.asarray(out2), np.asarray(x) * 1.7,
                               rtol=1e-6, atol=1e-6)

    # Awkward (non-128-divisible) shape exercises the pad+slice path.
    x_odd = jax.random.normal(jax.random.PRNGKey(1), (3, 5, 7),
                              dtype=jnp.float32)
    out3 = jax.jit(scalar_mult)(x_odd, k2)
    jax.block_until_ready(out3)
    np.testing.assert_allclose(np.asarray(out3), np.asarray(x_odd) * 1.7,
                               rtol=1e-6, atol=1e-6)

    # bf16 input: multiply happens in f32, result cast back to bf16.
    x_bf16 = x.astype(jnp.bfloat16)
    out4 = jax.jit(scalar_mult)(x_bf16, k2)
    jax.block_until_ready(out4)
    ref_bf16 = (np.asarray(x_bf16, dtype=np.float32) * 1.7).astype(
        jnp.bfloat16)
    np.testing.assert_array_equal(np.asarray(out4), np.asarray(ref_bf16))

    print("KERNEL_OK")
</pallas_src>

<mosaic_0001>
module attributes {stable_mosaic.version = 11 : i64} {
  func.func @scalar_mult_kernel(%arg0: i32, %arg1: memref<1xf32, #tpu.memory_space<smem>>, %arg2: memref<2x1024xf32, #tpu.memory_space<vmem>>, %arg3: memref<2x1024xf32, #tpu.memory_space<vmem>>) attributes {dimension_semantics = [#tpu.dimension_semantics<parallel>], iteration_bounds = array<i64: 1>, scalar_prefetch = 0 : i64, scratch_operands = 0 : i64, tpu.core_type = #tpu.core_type<tc>, window_params = [{transform_indices = @transform_0, window_bounds = array<i64: 1>}, {transform_indices = @transform_1, window_bounds = array<i64: 2, 1024>}, {transform_indices = @transform_2, window_bounds = array<i64: 2, 1024>}]} {
    %c0 = arith.constant 0 : index
    %c0_0 = arith.constant 0 : index
    %0 = vector.load %arg2[%c0, %c0_0] : memref<2x1024xf32, #tpu.memory_space<vmem>>, vector<2x1024xf32>
    %c0_1 = arith.constant 0 : index
    %1 = memref.load %arg1[%c0_1] : memref<1xf32, #tpu.memory_space<smem>>
    %2 = vector.broadcast %1 : f32 to vector<2x1024xf32>
    %3 = arith.mulf %0, %2 : vector<2x1024xf32>
    %c0_2 = arith.constant 0 : index
    %c0_3 = arith.constant 0 : index
    %4 = vector.load %arg3[%c0_2, %c0_3] : memref<2x1024xf32, #tpu.memory_space<vmem>>, vector<2x1024xf32>
    tpu.vector_store %arg3[%c0_2, %c0_3], %3 {strides = array<i32>} : memref<2x1024xf32, #tpu.memory_space<vmem>>, vector<2x1024xf32>,
    return
  }
  func.func @transform_0(%arg0: i32) -> i32 {
    %c0_i32 = arith.constant 0 : i32
    %c0_i32_0 = arith.constant 0 : i32
    return %c0_i32 : i32
  }
  func.func @transform_1(%arg0: i32) -> (i32, i32) {
    %c0_i32 = arith.constant 0 : i32
    %c0_i32_0 = arith.constant 0 : i32
    return %arg0, %c0_i32 : i32, i32
  }
  func.func @transform_2(%arg0: i32) -> (i32, i32) {
    %c0_i32 = arith.constant 0 : i32
    %c0_i32_0 = arith.constant 0 : i32
    return %arg0, %c0_i32 : i32, i32
  }
}

</mosaic_0001>

<bundles_post_ra>
// kernel: scalar_mult.1
= control target key start
LH: loop header
LB: loop body
LE: loop exit
PB: predicated region body
PF: predicated region fallthrough
CT: control target
= control target key end

     0   :  { %s54_s0 = inlined_call_operand.<no memory space> [shape: f32[1], index: 0, kind: input, shape index: {}]   ;;  %s55_s1 = inlined_call_operand.vmem [shape: f32[2,1024], index: 1, kind: input, shape index: {}]   ;;  %s56_s2 = inlined_call_operand.vmem [shape: f32[2,1024], index: 2, kind: output, shape index: {}]  }
   0x1   :  { %v12_v0 = vld [vmem:[%s55_s1] sm:$0xff]  ;;  %v15_v1 = vstv %s54_s0  ;;  %v13_v2 = vld [vmem:[%s55_s1 + $0x8] sm:$0xff] }
   0x2   :  { %v16_v3 = vmul.f32 %v15_v1, %v12_v0  ;;  %v17_v4 = vmul.f32 %v15_v1, %v13_v2 }
   0x4   :  { %18 = vst [vmem:[%s56_s2] sm:$0xff] %v16_v3 }
   0x5   :  { %19 = vst [vmem:[%s56_s2 + $0x8] sm:$0xff] %v17_v4 }

</bundles_post_ra>
